<compile_context>
chip_gen: v6e
topology: v6e:2x2x1
jax: 0.10.0
libtpu: 0.0.40
codegen_flags: <defaults>
</compile_context>

<pallas_src>
import functools

import jax
import jax.numpy as jnp
from jax.experimental import pallas as pl
from jax.experimental.pallas import tpu as pltpu

RNN_HIDDEN = 128
DEFAULT_TILE_N = 512   # rows per grid step (multiple of 16); ~2 MiB of pipelined bufs


def _round_up(x, m):
    return (x + m - 1) // m * m


def _sigmoid(x):
    # one EUP transcendental (tanh) instead of exp + divide
    return 0.5 * (jnp.tanh(0.5 * x) + 1.0)


# ----------------------------------------------------------------------------
# Pallas kernel: fused  relu(x@W1+b1) -> GRUCell -> q = h'@W3+b3   (one row tile)
# ----------------------------------------------------------------------------
def globalq_kernel(inp_ref, h_ref,
                   w1_ref, b1_ref,
                   wg_ref, bg_ref,
                   whn_ref, bhn_ref,
                   w3_ref, b3_ref,
                   q_ref, hout_ref):
    H = RNN_HIDDEN

    h = h_ref[...]                                   # f32 (T, H)
    h_bf = h.astype(jnp.bfloat16)

    # fc1 + ReLU (bf16 operands, f32 accumulation on the MXU)
    x = jnp.dot(inp_ref[...].astype(jnp.bfloat16), w1_ref[...],
                preferred_element_type=jnp.float32) + b1_ref[...]
    x = jnp.maximum(x, 0.0)

    # Fused GRU matmul: [x | h] @ [[Wih_r Wih_z Wih_n],
    #                              [Whh_r Whh_z   0  ]]   (K = 256)
    xh = jnp.concatenate([x.astype(jnp.bfloat16), h_bf], axis=-1)     # (T, 2H)
    s = jnp.dot(xh, wg_ref[...], preferred_element_type=jnp.float32) + bg_ref[...]
    # candidate-gate hidden term: h @ Whh_n + bhh_n  (128x128 dot)
    h_n = jnp.dot(h_bf, whn_ref[...], preferred_element_type=jnp.float32) + bhn_ref[...]

    # PyTorch GRUCell gate order: r, z, n
    r = _sigmoid(s[:, 0 * H:1 * H])
    z = _sigmoid(s[:, 1 * H:2 * H])
    n = jnp.tanh(s[:, 2 * H:3 * H] + r * h_n)
    h_new = (1.0 - z) * n + z * h

    # fc3 (n_actions padded to a lane-dense 128 columns)
    q = jnp.dot(h_new.astype(jnp.bfloat16), w3_ref[...],
                preferred_element_type=jnp.float32) + b3_ref[...]

    q_ref[...] = q
    hout_ref[...] = h_new


# ----------------------------------------------------------------------------
# Kernel-side parameter layout: pad / fuse / cast (done once, outside the kernel).
# ----------------------------------------------------------------------------
def prepare_kernel_params(params, n_actions):
    H = RNN_HIDDEN
    d_in = params["w1_t"].shape[0]
    d_pad = _round_up(d_in, 128)
    a_pad = _round_up(n_actions, 128)

    w1 = jnp.zeros((d_pad, H), jnp.float32).at[:d_in, :].set(params["w1_t"])

    wih, whh = params["wih_t"], params["whh_t"]
    # (2H, 3H): top block = Wih, bottom block = [Whh_r | Whh_z | 0]
    wg = jnp.concatenate(
        [wih,
         jnp.concatenate([whh[:, :2 * H], jnp.zeros((H, H), jnp.float32)], axis=1)],
        axis=0)
    # bias: (bih+bhh) for r/z columns, bih only for n column
    bg = jnp.concatenate(
        [params["bih"][:, :2 * H] + params["bhh"][:, :2 * H],
         params["bih"][:, 2 * H:]], axis=1)

    w3 = jnp.zeros((H, a_pad), jnp.float32).at[:, :n_actions].set(params["w3_t"])
    b3 = jnp.zeros((1, a_pad), jnp.float32).at[:, :n_actions].set(params["b3"])

    return {
        "w1": w1.astype(jnp.bfloat16), "b1": params["b1"],
        "wg": wg.astype(jnp.bfloat16), "bg": bg,
        "whn": whh[:, 2 * H:].astype(jnp.bfloat16), "bhn": params["bhh"][:, 2 * H:],
        "w3": w3.astype(jnp.bfloat16), "b3": b3,
    }


# ----------------------------------------------------------------------------
# pallas_call wrapper: row-tiled grid, resident weights, aliased hidden state.
# ----------------------------------------------------------------------------
def globalq_forward_core(x2d, h2d, kp, tile_n=DEFAULT_TILE_N):
    """x2d: (N, D_pad) f32, h2d: (N, 128) f32 -> (q_pad (N, A_pad), h (N, 128))."""
    N, d_pad = x2d.shape
    H = RNN_HIDDEN
    a_pad = kp["w3"].shape[1]

    tile_n = min(tile_n, _round_up(N, 16))
    n_pad = _round_up(N, tile_n)
    if n_pad != N:
        x2d = jnp.pad(x2d, ((0, n_pad - N), (0, 0)))
        h2d = jnp.pad(h2d, ((0, n_pad - N), (0, 0)))
    grid = (n_pad // tile_n,)

    def rows(cols):
        return pl.BlockSpec((tile_n, cols), lambda i: (i, 0))

    def resident(arr):
        return pl.BlockSpec(arr.shape, lambda i: (0, 0))

    flops = 2 * n_pad * H * (d_pad + 6 * H + H + a_pad)
    cost = pl.CostEstimate(
        flops=flops,
        transcendentals=3 * n_pad * H,
        bytes_accessed=4 * n_pad * (d_pad + 3 * H + a_pad))

    q_pad, h_new = pl.pallas_call(
        globalq_kernel,
        out_shape=(jax.ShapeDtypeStruct((n_pad, a_pad), jnp.float32),
                   jax.ShapeDtypeStruct((n_pad, H), jnp.float32)),
        grid=grid,
        in_specs=[rows(d_pad), rows(H),
                  resident(kp["w1"]), resident(kp["b1"]),
                  resident(kp["wg"]), resident(kp["bg"]),
                  resident(kp["whn"]), resident(kp["bhn"]),
                  resident(kp["w3"]), resident(kp["b3"])],
        out_specs=(rows(a_pad), rows(H)),
        input_output_aliases={1: 1},                     # h_in -> h_out
        compiler_params=pltpu.CompilerParams(
            dimension_semantics=("parallel",)),
        cost_estimate=cost,
    )(x2d, h2d, kp["w1"], kp["b1"], kp["wg"], kp["bg"],
      kp["whn"], kp["bhn"], kp["w3"], kp["b3"])
    return q_pad[:N], h_new[:N]


# ----------------------------------------------------------------------------
# _build_inputs equivalent (plain JAX glue), for an integer timestep t >= 1.
# ----------------------------------------------------------------------------
def build_inputs(batch, t, n_agents, n_actions):
    bs = batch["state"].shape[0]
    max_t = 1
    ts = slice(t, t + 1)

    pieces = []
    # state, repeated over agents
    state = batch["state"][:, ts]                                   # (bs,1,Ds)
    pieces.append(jnp.broadcast_to(state[:, :, None, :],
                                   (bs, max_t, n_agents, state.shape[-1])))
    # per-agent obs
    pieces.append(batch["obs"][:, ts])                              # (bs,1,A,Do)
    # all agents' actions, masked so own action is zeroed
    actions = batch["actions_onehot"][:, ts].reshape(bs, max_t, 1, -1)
    actions = jnp.broadcast_to(actions, (bs, max_t, n_agents, n_agents * n_actions))
    agent_mask = 1.0 - jnp.eye(n_agents, dtype=jnp.float32)
    agent_mask = jnp.repeat(agent_mask.reshape(-1, 1), n_actions, axis=1)
    agent_mask = agent_mask.reshape(n_agents, n_agents * n_actions)
    pieces.append(actions * agent_mask[None, None])
    # last actions (t-1), repeated over agents
    last_actions = batch["actions_onehot"][:, slice(t - 1, t)].reshape(bs, max_t, 1, -1)
    pieces.append(jnp.broadcast_to(last_actions,
                                   (bs, max_t, n_agents, n_agents * n_actions)))
    # agent id one-hot
    eye = jnp.eye(n_agents, dtype=jnp.float32)
    pieces.append(jnp.broadcast_to(eye[None, None], (bs, max_t, n_agents, n_agents)))

    inputs = jnp.concatenate(
        [p.reshape(bs, max_t, n_agents, -1) for p in pieces], axis=-1)
    return inputs  # (bs, 1, n_agents, D_in)


@functools.partial(jax.jit, static_argnames=("t", "n_agents", "n_actions"))
def globalq_forward(batch, hidden_state, params, t, n_agents, n_actions):
    inputs = build_inputs(batch, t, n_agents, n_actions)       # (bs,1,A,D_in)
    bs, d_in = inputs.shape[0], inputs.shape[-1]

    kp = prepare_kernel_params(params, n_actions)
    d_pad = kp["w1"].shape[0]

    x2d = inputs.reshape(-1, d_in).astype(jnp.float32)
    if d_pad != d_in:
        x2d = jnp.pad(x2d, ((0, 0), (0, d_pad - d_in)))         # lane-dense D_in
    h2d = hidden_state.reshape(-1, RNN_HIDDEN).astype(jnp.float32)

    q_pad, h = globalq_forward_core(x2d, h2d, kp)
    q = q_pad[:, :n_actions]                                    # drop output padding
    return q.reshape(bs, n_agents, -1), h.reshape(bs, n_agents, -1)


# ----------------------------------------------------------------------------
# Pure-JAX f32 reference for verification.
# ----------------------------------------------------------------------------
def reference_forward(batch, hidden_state, params, t, n_agents, n_actions):
    inputs = build_inputs(batch, t, n_agents, n_actions)
    bs = inputs.shape[0]
    x2d = inputs.reshape(-1, inputs.shape[-1])
    h = hidden_state.reshape(-1, RNN_HIDDEN)
    x = jnp.maximum(x2d @ params["w1_t"] + params["b1"], 0.0)
    gi = x @ params["wih_t"] + params["bih"]
    gh = h @ params["whh_t"] + params["bhh"]
    H = RNN_HIDDEN
    r = jax.nn.sigmoid(gi[:, :H] + gh[:, :H])
    z = jax.nn.sigmoid(gi[:, H:2 * H] + gh[:, H:2 * H])
    n = jnp.tanh(gi[:, 2 * H:] + r * gh[:, 2 * H:])
    h_new = (1.0 - z) * n + z * h
    q = h_new @ params["w3_t"] + params["b3"]
    return q.reshape(bs, n_agents, -1), h_new.reshape(bs, n_agents, -1)


# ----------------------------------------------------------------------------
# Deterministic parameter init (shapes match the PyTorch module __init__).
# ----------------------------------------------------------------------------
def init_params(key, input_shape, n_actions):
    ks = jax.random.split(key, 8)
    H = RNN_HIDDEN
    s = 0.05
    return {
        # fc1: Linear(input_shape, H)   -> stored transposed (in, out)
        "w1_t": s * jax.random.normal(ks[0], (input_shape, H), jnp.float32),
        "b1":   s * jax.random.normal(ks[1], (1, H), jnp.float32),
        # GRUCell(H, H): weight_ih (3H, H), weight_hh (3H, H) -> transposed
        "wih_t": s * jax.random.normal(ks[2], (H, 3 * H), jnp.float32),
        "bih":   s * jax.random.normal(ks[3], (1, 3 * H), jnp.float32),
        "whh_t": s * jax.random.normal(ks[4], (H, 3 * H), jnp.float32),
        "bhh":   s * jax.random.normal(ks[5], (1, 3 * H), jnp.float32),
        # fc3: Linear(H, n_actions)
        "w3_t": s * jax.random.normal(ks[6], (H, n_actions), jnp.float32),
        "b3":   s * jax.random.normal(ks[7], (1, n_actions), jnp.float32),
    }


if __name__ == "__main__":
    bs, T = 2, 8
    n_agents, n_actions = 4, 6
    state_dim, obs_dim = 16, 12
    t = 1

    # input_shape per _get_input_shape: state + obs + n_actions*n_agents*2 + n_agents
    input_shape = state_dim + obs_dim + n_actions * n_agents * 2 + n_agents  # = 80

    key = jax.random.PRNGKey(0)
    k_state, k_obs, k_act, k_h, k_param = jax.random.split(key, 5)

    batch = {
        "state": jax.random.normal(k_state, (bs, T, state_dim), jnp.float32),
        "obs": jax.random.normal(k_obs, (bs, T, n_agents, obs_dim), jnp.float32),
        "actions_onehot": jax.nn.one_hot(
            jax.random.randint(k_act, (bs, T, n_agents), 0, n_actions),
            n_actions, dtype=jnp.float32),
    }
    hidden_state = jax.random.normal(k_h, (bs, n_agents, RNN_HIDDEN), jnp.float32)
    params = init_params(k_param, input_shape, n_actions)

    q, h = globalq_forward(batch, hidden_state, params, t, n_agents, n_actions)
    q, h = jax.block_until_ready((q, h))

    q_ref, h_ref = reference_forward(batch, hidden_state, params, t, n_agents, n_actions)
    assert q.shape == (bs, n_agents, n_actions) and h.shape == (bs, n_agents, RNN_HIDDEN)
    # bf16 matmul operands (f32 accumulation) -> loosened tolerance vs the f32 reference
    assert jnp.allclose(q, q_ref, atol=3e-2, rtol=3e-2)
    assert jnp.allclose(h, h_ref, atol=3e-2, rtol=3e-2)

    print("KERNEL_OK")
</pallas_src>

<mosaic_0001>
module attributes {stable_mosaic.version = 11 : i64} {
  func.func @globalq_kernel(%arg0: i32, %arg1: memref<16x128xf32, #tpu.memory_space<vmem>>, %arg2: memref<16x128xf32, #tpu.memory_space<vmem>>, %arg3: memref<128x128xbf16, #tpu.memory_space<vmem>>, %arg4: memref<1x128xf32, #tpu.memory_space<vmem>>, %arg5: memref<256x384xbf16, #tpu.memory_space<vmem>>, %arg6: memref<1x384xf32, #tpu.memory_space<vmem>>, %arg7: memref<128x128xbf16, #tpu.memory_space<vmem>>, %arg8: memref<1x128xf32, #tpu.memory_space<vmem>>, %arg9: memref<128x128xbf16, #tpu.memory_space<vmem>>, %arg10: memref<1x128xf32, #tpu.memory_space<vmem>>, %arg11: memref<16x128xf32, #tpu.memory_space<vmem>>, %arg12: memref<16x128xf32, #tpu.memory_space<vmem>>) attributes {dimension_semantics = [#tpu.dimension_semantics<parallel>], iteration_bounds = array<i64: 1>, scalar_prefetch = 0 : i64, scratch_operands = 0 : i64, tpu.core_type = #tpu.core_type<tc>, window_params = [{transform_indices = @transform_0, window_bounds = array<i64: 16, 128>}, {transform_indices = @transform_1, window_bounds = array<i64: 16, 128>}, {pipeline_mode = #tpu.pipeline_mode<synchronous>, transform_indices = @transform_2, window_bounds = array<i64: 128, 128>}, {pipeline_mode = #tpu.pipeline_mode<synchronous>, transform_indices = @transform_3, window_bounds = array<i64: 1, 128>}, {pipeline_mode = #tpu.pipeline_mode<synchronous>, transform_indices = @transform_4, window_bounds = array<i64: 256, 384>}, {pipeline_mode = #tpu.pipeline_mode<synchronous>, transform_indices = @transform_5, window_bounds = array<i64: 1, 384>}, {pipeline_mode = #tpu.pipeline_mode<synchronous>, transform_indices = @transform_6, window_bounds = array<i64: 128, 128>}, {pipeline_mode = #tpu.pipeline_mode<synchronous>, transform_indices = @transform_7, window_bounds = array<i64: 1, 128>}, {pipeline_mode = #tpu.pipeline_mode<synchronous>, transform_indices = @transform_8, window_bounds = array<i64: 128, 128>}, {pipeline_mode = #tpu.pipeline_mode<synchronous>, transform_indices = @transform_9, window_bounds = array<i64: 1, 128>}, {transform_indices = @transform_10, window_bounds = array<i64: 16, 128>}, {transform_indices = @transform_11, window_bounds = array<i64: 16, 128>}]} {
    %c0 = arith.constant 0 : index
    %c0_0 = arith.constant 0 : index
    %0 = vector.load %arg2[%c0, %c0_0] : memref<16x128xf32, #tpu.memory_space<vmem>>, vector<16x128xf32>
    %1 = arith.truncf %0 : vector<16x128xf32> to vector<16x128xbf16>
    %c0_1 = arith.constant 0 : index
    %c0_2 = arith.constant 0 : index
    %2 = vector.load %arg1[%c0_1, %c0_2] : memref<16x128xf32, #tpu.memory_space<vmem>>, vector<16x128xf32>
    %3 = arith.truncf %2 : vector<16x128xf32> to vector<16x128xbf16>
    %c0_3 = arith.constant 0 : index
    %c0_4 = arith.constant 0 : index
    %4 = vector.load %arg3[%c0_3, %c0_4] : memref<128x128xbf16, #tpu.memory_space<vmem>>, vector<128x128xbf16>
    %cst = arith.constant dense<0.000000e+00> : vector<16x128xf32>
    %5 = tpu.matmul %3, %4, %cst {dimension_numbers = #tpu.dot_dimension_numbers<[1], [0], [0], [1], [0, 0, 1, 1], [], []>} : vector<16x128xbf16>, vector<128x128xbf16>, vector<16x128xf32> -> vector<16x128xf32>
    %c0_5 = arith.constant 0 : index
    %c0_6 = arith.constant 0 : index
    %6 = vector.load %arg4[%c0_5, %c0_6] : memref<1x128xf32, #tpu.memory_space<vmem>>, vector<1x128xf32>
    %7 = vector.broadcast %6 : vector<1x128xf32> to vector<16x128xf32>
    %8 = arith.addf %5, %7 : vector<16x128xf32>
    %cst_7 = arith.constant 0.000000e+00 : f32
    %9 = vector.broadcast %cst_7 : f32 to vector<16x128xf32>
    %10 = arith.maximumf %8, %9 : vector<16x128xf32>
    %11 = arith.truncf %10 : vector<16x128xf32> to vector<16x128xbf16>
    %12 = tpu.concatenate %11, %1 in 1 : vector<16x128xbf16>, vector<16x128xbf16> -> vector<16x256xbf16>
    %c0_8 = arith.constant 0 : index
    %c0_9 = arith.constant 0 : index
    %13 = vector.load %arg5[%c0_8, %c0_9] : memref<256x384xbf16, #tpu.memory_space<vmem>>, vector<256x384xbf16>
    %cst_10 = arith.constant dense<0.000000e+00> : vector<16x384xf32>
    %14 = tpu.matmul %12, %13, %cst_10 {dimension_numbers = #tpu.dot_dimension_numbers<[1], [0], [0], [1], [0, 0, 1, 1], [], []>} : vector<16x256xbf16>, vector<256x384xbf16>, vector<16x384xf32> -> vector<16x384xf32>
    %c0_11 = arith.constant 0 : index
    %c0_12 = arith.constant 0 : index
    %15 = vector.load %arg6[%c0_11, %c0_12] : memref<1x384xf32, #tpu.memory_space<vmem>>, vector<1x384xf32>
    %16 = vector.broadcast %15 : vector<1x384xf32> to vector<16x384xf32>
    %17 = arith.addf %14, %16 : vector<16x384xf32>
    %c0_13 = arith.constant 0 : index
    %c0_14 = arith.constant 0 : index
    %18 = vector.load %arg7[%c0_13, %c0_14] : memref<128x128xbf16, #tpu.memory_space<vmem>>, vector<128x128xbf16>
    %cst_15 = arith.constant dense<0.000000e+00> : vector<16x128xf32>
    %19 = tpu.matmul %1, %18, %cst_15 {dimension_numbers = #tpu.dot_dimension_numbers<[1], [0], [0], [1], [0, 0, 1, 1], [], []>} : vector<16x128xbf16>, vector<128x128xbf16>, vector<16x128xf32> -> vector<16x128xf32>
    %c0_16 = arith.constant 0 : index
    %c0_17 = arith.constant 0 : index
    %20 = vector.load %arg8[%c0_16, %c0_17] : memref<1x128xf32, #tpu.memory_space<vmem>>, vector<1x128xf32>
    %21 = vector.broadcast %20 : vector<1x128xf32> to vector<16x128xf32>
    %22 = arith.addf %19, %21 : vector<16x128xf32>
    %23 = vector.extract_strided_slice %17 {offsets = [0, 0], sizes = [16, 128], strides = [1, 1]} : vector<16x384xf32> to vector<16x128xf32>
    %cst_18 = arith.constant 5.000000e-01 : f32
    %24 = vector.broadcast %cst_18 : f32 to vector<16x128xf32>
    %25 = arith.mulf %24, %23 : vector<16x128xf32>
    %26 = math.tanh %25 : vector<16x128xf32>
    %cst_19 = arith.constant 1.000000e+00 : f32
    %27 = vector.broadcast %cst_19 : f32 to vector<16x128xf32>
    %28 = arith.addf %26, %27 : vector<16x128xf32>
    %cst_20 = arith.constant 5.000000e-01 : f32
    %29 = vector.broadcast %cst_20 : f32 to vector<16x128xf32>
    %30 = arith.mulf %29, %28 : vector<16x128xf32>
    %31 = vector.extract_strided_slice %17 {offsets = [0, 128], sizes = [16, 128], strides = [1, 1]} : vector<16x384xf32> to vector<16x128xf32>
    %cst_21 = arith.constant 5.000000e-01 : f32
    %32 = vector.broadcast %cst_21 : f32 to vector<16x128xf32>
    %33 = arith.mulf %32, %31 : vector<16x128xf32>
    %34 = math.tanh %33 : vector<16x128xf32>
    %cst_22 = arith.constant 1.000000e+00 : f32
    %35 = vector.broadcast %cst_22 : f32 to vector<16x128xf32>
    %36 = arith.addf %34, %35 : vector<16x128xf32>
    %cst_23 = arith.constant 5.000000e-01 : f32
    %37 = vector.broadcast %cst_23 : f32 to vector<16x128xf32>
    %38 = arith.mulf %37, %36 : vector<16x128xf32>
    %39 = vector.extract_strided_slice %17 {offsets = [0, 256], sizes = [16, 128], strides = [1, 1]} : vector<16x384xf32> to vector<16x128xf32>
    %40 = arith.mulf %30, %22 : vector<16x128xf32>
    %41 = arith.addf %39, %40 : vector<16x128xf32>
    %42 = math.tanh %41 : vector<16x128xf32>
    %cst_24 = arith.constant 1.000000e+00 : f32
    %43 = vector.broadcast %cst_24 : f32 to vector<16x128xf32>
    %44 = arith.subf %43, %38 : vector<16x128xf32>
    %45 = arith.mulf %44, %42 : vector<16x128xf32>
    %46 = arith.mulf %38, %0 : vector<16x128xf32>
    %47 = arith.addf %45, %46 : vector<16x128xf32>
    %48 = arith.truncf %47 : vector<16x128xf32> to vector<16x128xbf16>
    %c0_25 = arith.constant 0 : index
    %c0_26 = arith.constant 0 : index
    %49 = vector.load %arg9[%c0_25, %c0_26] : memref<128x128xbf16, #tpu.memory_space<vmem>>, vector<128x128xbf16>
    %cst_27 = arith.constant dense<0.000000e+00> : vector<16x128xf32>
    %50 = tpu.matmul %48, %49, %cst_27 {dimension_numbers = #tpu.dot_dimension_numbers<[1], [0], [0], [1], [0, 0, 1, 1], [], []>} : vector<16x128xbf16>, vector<128x128xbf16>, vector<16x128xf32> -> vector<16x128xf32>
    %c0_28 = arith.constant 0 : index
    %c0_29 = arith.constant 0 : index
    %51 = vector.load %arg10[%c0_28, %c0_29] : memref<1x128xf32, #tpu.memory_space<vmem>>, vector<1x128xf32>
    %52 = vector.broadcast %51 : vector<1x128xf32> to vector<16x128xf32>
    %53 = arith.addf %50, %52 : vector<16x128xf32>
    %c0_30 = arith.constant 0 : index
    %c0_31 = arith.constant 0 : index
    %54 = vector.load %arg11[%c0_30, %c0_31] : memref<16x128xf32, #tpu.memory_space<vmem>>, vector<16x128xf32>
    tpu.vector_store %arg11[%c0_30, %c0_31], %53 {strides = array<i32>} : memref<16x128xf32, #tpu.memory_space<vmem>>, vector<16x128xf32>,
    %c0_32 = arith.constant 0 : index
    %c0_33 = arith.constant 0 : index
    %55 = vector.load %arg12[%c0_32, %c0_33] : memref<16x128xf32, #tpu.memory_space<vmem>>, vector<16x128xf32>
    tpu.vector_store %arg12[%c0_32, %c0_33], %47 {strides = array<i32>} : memref<16x128xf32, #tpu.memory_space<vmem>>, vector<16x128xf32>,
    return
  }
  func.func @transform_0(%arg0: i32) -> (i32, i32) {
    %c0_i32 = arith.constant 0 : i32
    %c0_i32_0 = arith.constant 0 : i32
    return %arg0, %c0_i32 : i32, i32
  }
  func.func @transform_1(%arg0: i32) -> (i32, i32) {
    %c0_i32 = arith.constant 0 : i32
    %c0_i32_0 = arith.constant 0 : i32
    return %arg0, %c0_i32 : i32, i32
  }
  func.func @transform_2(%arg0: i32) -> (i32, i32) {
    %c0_i32 = arith.constant 0 : i32
    %c0_i32_0 = arith.constant 0 : i32
    %c0_i32_1 = arith.constant 0 : i32
    return %c0_i32, %c0_i32_0 : i32, i32
  }
  func.func @transform_3(%arg0: i32) -> (i32, i32) {
    %c0_i32 = arith.constant 0 : i32
    %c0_i32_0 = arith.constant 0 : i32
    %c0_i32_1 = arith.constant 0 : i32
    return %c0_i32, %c0_i32_0 : i32, i32
  }
  func.func @transform_4(%arg0: i32) -> (i32, i32) {
    %c0_i32 = arith.constant 0 : i32
    %c0_i32_0 = arith.constant 0 : i32
    %c0_i32_1 = arith.constant 0 : i32
    return %c0_i32, %c0_i32_0 : i32, i32
  }
  func.func @transform_5(%arg0: i32) -> (i32, i32) {
    %c0_i32 = arith.constant 0 : i32
    %c0_i32_0 = arith.constant 0 : i32
    %c0_i32_1 = arith.constant 0 : i32
    return %c0_i32, %c0_i32_0 : i32, i32
  }
  func.func @transform_6(%arg0: i32) -> (i32, i32) {
    %c0_i32 = arith.constant 0 : i32
    %c0_i32_0 = arith.constant 0 : i32
    %c0_i32_1 = arith.constant 0 : i32
    return %c0_i32, %c0_i32_0 : i32, i32
  }
  func.func @transform_7(%arg0: i32) -> (i32, i32) {
    %c0_i32 = arith.constant 0 : i32
    %c0_i32_0 = arith.constant 0 : i32
    %c0_i32_1 = arith.constant 0 : i32
    return %c0_i32, %c0_i32_0 : i32, i32
  }
  func.func @transform_8(%arg0: i32) -> (i32, i32) {
    %c0_i32 = arith.constant 0 : i32
    %c0_i32_0 = arith.constant 0 : i32
    %c0_i32_1 = arith.constant 0 : i32
    return %c0_i32, %c0_i32_0 : i32, i32
  }
  func.func @transform_9(%arg0: i32) -> (i32, i32) {
    %c0_i32 = arith.constant 0 : i32
    %c0_i32_0 = arith.constant 0 : i32
    %c0_i32_1 = arith.constant 0 : i32
    return %c0_i32, %c0_i32_0 : i32, i32
  }
  func.func @transform_10(%arg0: i32) -> (i32, i32) {
    %c0_i32 = arith.constant 0 : i32
    %c0_i32_0 = arith.constant 0 : i32
    return %arg0, %c0_i32 : i32, i32
  }
  func.func @transform_11(%arg0: i32) -> (i32, i32) {
    %c0_i32 = arith.constant 0 : i32
    %c0_i32_0 = arith.constant 0 : i32
    return %arg0, %c0_i32 : i32, i32
  }
}

</mosaic_0001>

<bundles_post_ra>
// kernel: globalq_forward.1
= control target key start
LH: loop header
LB: loop body
LE: loop exit
PB: predicated region body
PF: predicated region fallthrough
CT: control target
= control target key end

     0   :  { %v1133_v0 = vmov 0.0   ;;  %vm1134_vm0 = vmmov 0   ;;  %s1485_s2 = inlined_call_operand.vmem [shape: bf16[128,128], index: 2, kind: input, shape index: {}]   ;;  %s1486_s4 = inlined_call_operand.vmem [shape: bf16[256,384], index: 4, kind: input, shape index: {}]   ;;  %s1487_s0 = inlined_call_operand.vmem [shape: f32[16,128], index: 0, kind: input, shape index: {}]   ;;  %s1488_s1 = inlined_call_operand.vmem [shape: f32[16,128], index: 1, kind: input, shape index: {}, may-alias: {1,11}]   ;;  %s1489_s6 = inlined_call_operand.vmem [shape: bf16[128,128], index: 6, kind: input, shape index: {}]   ;;  %s1490_s3 = inlined_call_operand.vmem [shape: f32[1,128], index: 3, kind: input, shape index: {}]   ;;  %s1491_s8 = inlined_call_operand.vmem [shape: bf16[128,128], index: 8, kind: input, shape index: {}]   ;;  %s1492_s5 = inlined_call_operand.vmem [shape: f32[1,384], index: 5, kind: input, shape index: {}]   ;;  %s1493_s7 = inlined_call_operand.vmem [shape: f32[1,128], index: 7, kind: input, shape index: {}]   ;;  %s1494_s11 = inlined_call_operand.vmem [shape: f32[16,128], index: 11, kind: output, shape index: {1}, may-alias: {1,11}]   ;;  %s1495_s9 = inlined_call_operand.vmem [shape: f32[1,128], index: 9, kind: input, shape index: {}]   ;;  %s1496_s10 = inlined_call_operand.vmem [shape: f32[16,128], index: 10, kind: output, shape index: {0}]  }
   0x1   :  { %971 = vmatprep.subr.bf16.mxu0 %v1133_v0  ;;  %v1033_v1 = vld [vmem:[%s1485_s2 + $0x38] sm:$0xff]   ;;  %987 = vmatprep.mubr.msk.bf16.mxu0 %vm1134_vm0, %v1133_v0  ;;  %v1034_v2 = vld [vmem:[%s1485_s2 + $0x30] sm:$0xff]   ;;  %v1035_v3 = vld [vmem:[%s1485_s2 + $0x28] sm:$0xff]  }
   0x2   :  { %972 = vmatpush3.bf16.msra.mxu0 %v1033_v1  ;;  %v1036_v4 = vld [vmem:[%s1485_s2 + $0x20] sm:$0xff]   ;;  %v1041_v5 = vld [vmem:[%s1486_s4 + $0xac] ss:$12 sps:$4 sm:$0xff]   ;;  %v1043_v6 = vld [vmem:[%s1486_s4 + $0xa8] ss:$12 sps:$4 sm:$0xff]  }
   0x3   :  { %973 = vmatprep.subr.bf16.mxu0 %v1133_v0  ;;  %v1044_v7 = vld [vmem:[%s1486_s4 + $0x94] ss:$12 sps:$4 sm:$0xff]   ;;  %496 = vmatprep.subr.bf16.mxu1 %v1041_v5  ;;  %v1046_v8 = vld [vmem:[%s1486_s4 + $0x90] ss:$12 sps:$4 sm:$0xff]   ;;  %v1049_v11 = vld [vmem:[%s1486_s4 + $0x78] ss:$12 sps:$4 sm:$0xff]  }
   0x4   :  { %497 = vmatpush1.bf16.msra.mxu1 %v1043_v6  ;;  %v1047_v9 = vld [vmem:[%s1486_s4 + $0x7c] ss:$12 sps:$4 sm:$0xff]   ;;  %v1050_v12 = vld [vmem:[%s1486_s4 + $0x64] ss:$12 sps:$4 sm:$0xff]   ;;  %v1052_v14 = vld [vmem:[%s1486_s4 + $0x60] ss:$12 sps:$4 sm:$0xff]  }
   0x5   :  { %498 = vmatprep.subr.bf16.mxu1 %v1044_v7  ;;  %v1037_v10 = vld [vmem:[%s1485_s2 + $0x18] sm:$0xff]   ;;  %v1038_v13 = vld [vmem:[%s1485_s2 + $0x10] sm:$0xff]   ;;  %v1039_v16 = vld [vmem:[%s1485_s2 + $0x8] sm:$0xff]  }
   0x6   :  { %974 = vmatpush3.bf16.msra.mxu0 %v1034_v2  ;;  %v1053_v15 = vld [vmem:[%s1486_s4 + $0x4c] ss:$12 sps:$4 sm:$0xff]   ;;  %v1040_v17 = vld [vmem:[%s1485_s2] sm:$0xff]   ;;  %v1055_v18 = vld [vmem:[%s1486_s4 + $0x48] ss:$12 sps:$4 sm:$0xff]  }
   0x7   :  { %975 = vmatprep.subr.bf16.mxu0 %v1133_v0  ;;  %v41_v19 = vld [vmem:[%s1487_s0] sm:$0xff]  ;;  %v42_v21 = vld [vmem:[%s1487_s0 + $0x8] sm:$0xff]  ;;  %v1065_v22 = vld [vmem:[%s1486_s4 + $0x170] ss:$12 sps:$4 sm:$0xff]  }
   0x8   :  { %499 = vmatpush1.bf16.msra.mxu1 %v1046_v8  ;;  %v1056_v20 = vld [vmem:[%s1486_s4 + $0x34] ss:$12 sps:$4 sm:$0xff]   ;;  %v1058_v23 = vld [vmem:[%s1486_s4 + $0x30] ss:$12 sps:$4 sm:$0xff]   ;;  %v43_v24 = vpack.c.bf16 %v42_v21, %v41_v19  ;;  %v1070_v27 = vld [vmem:[%s1486_s4 + $0x158] ss:$12 sps:$4 sm:$0xff]  }
   0x9   :  { %500 = vmatprep.subr.bf16.mxu1 %v1047_v9  ;;  %v1059_v25 = vld [vmem:[%s1486_s4 + $0x1c] ss:$12 sps:$4 sm:$0xff]   ;;  %v1061_v28 = vld [vmem:[%s1486_s4 + $0x18] ss:$12 sps:$4 sm:$0xff]   ;;  %v1075_v31 = vld [vmem:[%s1486_s4 + $0x140] ss:$12 sps:$4 sm:$0xff]  }
   0xa   :  { %976 = vmatpush3.bf16.msra.mxu0 %v1035_v3  ;;  %v1068_v26 = vld [vmem:[%s1486_s4 + $0xb0] ss:$12 sps:$4 sm:$0xff]   ;;  %v1073_v30 = vld [vmem:[%s1486_s4 + $0x98] ss:$12 sps:$4 sm:$0xff]   ;;  %v1064_v32 = vld [vmem:[%s1486_s4] ss:$12 sps:$4 sm:$0xff]  }
   0xb   :  { %977 = vmatprep.subr.bf16.mxu0 %v1133_v0  ;;  %v1062_v29 = vld [vmem:[%s1486_s4 + $0x4] ss:$12 sps:$4 sm:$0xff]   ;;  %v1066_v33 = vld [vmem:[%s1486_s4 + $0x16c] ss:$12 sps:$4 sm:$0xff]   ;;  %v1069_v34 = vld [vmem:[%s1486_s4 + $0x168] ss:$12 sps:$4 sm:$0xff]  }
   0xc   :  { %501 = vmatpush1.bf16.msra.mxu1 %v1049_v11  ;;  %v1078_v35 = vld [vmem:[%s1486_s4 + $0x80] ss:$12 sps:$4 sm:$0xff]   ;;  %v1080_v37 = vld [vmem:[%s1486_s4 + $0x128] ss:$12 sps:$4 sm:$0xff]   ;;  %v1085_v39 = vld [vmem:[%s1486_s4 + $0x110] ss:$12 sps:$4 sm:$0xff]  }
   0xd   :  { %502 = vmatprep.subr.bf16.mxu1 %v1050_v12  ;;  %v1071_v36 = vld [vmem:[%s1486_s4 + $0x154] ss:$12 sps:$4 sm:$0xff]   ;;  %v1074_v40 = vld [vmem:[%s1486_s4 + $0x150] ss:$12 sps:$4 sm:$0xff]   ;;  %v1090_v43 = vld [vmem:[%s1486_s4 + $0xf8] ss:$12 sps:$4 sm:$0xff]  }
   0xe   :  { %978 = vmatpush3.bf16.msra.mxu0 %v1036_v4  ;;  %v1083_v38 = vld [vmem:[%s1486_s4 + $0x68] ss:$12 sps:$4 sm:$0xff]   ;;  %v1088_v42 = vld [vmem:[%s1486_s4 + $0x50] ss:$12 sps:$4 sm:$0xff]   ;;  %v1079_v44 = vld [vmem:[%s1486_s4 + $0x138] ss:$12 sps:$4 sm:$0xff]  }
   0xf   :  { %979 = vmatprep.subr.bf16.mxu0 %v1133_v0  ;;  %v1076_v41 = vld [vmem:[%s1486_s4 + $0x13c] ss:$12 sps:$4 sm:$0xff]   ;;  %v1081_v45 = vld [vmem:[%s1486_s4 + $0x124] ss:$12 sps:$4 sm:$0xff]   ;;  %v1084_v47 = vld [vmem:[%s1486_s4 + $0x120] ss:$12 sps:$4 sm:$0xff]  }
  0x10   :  { %503 = vmatpush1.bf16.msra.mxu1 %v1052_v14  ;;  %v1093_v46 = vld [vmem:[%s1486_s4 + $0x38] ss:$12 sps:$4 sm:$0xff]   ;;  %v1089_v49 = vld [vmem:[%s1486_s4 + $0x108] ss:$12 sps:$4 sm:$0xff]   ;;  %v1094_v51 = vld [vmem:[%s1486_s4 + $0xf0] ss:$12 sps:$4 sm:$0xff]  }
  0x11   :  { %504 = vmatprep.subr.bf16.mxu1 %v1053_v15  ;;  %v1086_v48 = vld [vmem:[%s1486_s4 + $0x10c] ss:$12 sps:$4 sm:$0xff]   ;;  %v1091_v50 = vld [vmem:[%s1486_s4 + $0xf4] ss:$12 sps:$4 sm:$0xff]   ;;  %v1096_v53 = vld [vmem:[%s1486_s4 + $0xdc] ss:$12 sps:$4 sm:$0xff]  }
  0x12   :  { %980 = vmatpush3.bf16.msra.mxu0 %v1037_v10  ;;  %v1095_v52 = vld [vmem:[%s1486_s4 + $0xe0] ss:$12 sps:$4 sm:$0xff]   ;;  %v1099_v55 = vld [vmem:[%s1486_s4 + $0xd8] ss:$12 sps:$4 sm:$0xff]   ;;  %v1100_v56 = vld [vmem:[%s1486_s4 + $0xc8] ss:$12 sps:$4 sm:$0xff]  }
  0x13   :  { %981 = vmatprep.subr.bf16.mxu0 %v1133_v0  ;;  %v1098_v54 = vld [vmem:[%s1486_s4 + $0x20] ss:$12 sps:$4 sm:$0xff]   ;;  %v1101_v57 = vld [vmem:[%s1486_s4 + $0xc4] ss:$12 sps:$4 sm:$0xff]   ;;  %v1103_v58 = vld [vmem:[%s1486_s4 + $0x8] ss:$12 sps:$4 sm:$0xff]  }
  0x14   :  { %505 = vmatpush1.bf16.msra.mxu1 %v1055_v18  ;;  %v1104_v59 = vld [vmem:[%s1486_s4 + $0xc0] ss:$12 sps:$4 sm:$0xff]   ;;  %v1105_v9 = vld [vmem:[%s1489_s6 + $0x38] sm:$0xff]   ;;  %v1106_v11 = vld [vmem:[%s1489_s6 + $0x30] sm:$0xff]  }
  0x15   :  { %506 = vmatprep.subr.bf16.mxu1 %v1056_v20  ;;  %v1382_v60 = vld [vmem:[%s1488_s1] sm:$0xff]  ;;  %v1387_v61 = vld [vmem:[%s1488_s1 + $0x8] sm:$0xff]  ;;  %v1109_v14 = vld [vmem:[%s1489_s6 + $0x18] sm:$0xff]  }
  0x16   :  { %982 = vmatpush3.bf16.msra.mxu0 %v1038_v13  ;;  %v40_v62 = vpack.c.bf16 %v1387_v61, %v1382_v60  ;;  %v847_v63 = vld [vmem:[%s1490_s3] ss:$0 sm:$0xff]  ;;  %v1107_v12 = vld [vmem:[%s1489_s6 + $0x28] sm:$0xff]   ;;  %v1110_v15 = vld [vmem:[%s1489_s6 + $0x10] sm:$0xff]  }
  0x17   :  { %983 = vmatprep.subr.bf16.mxu0 %v1133_v0  ;;  %v1108_v13 = vld [vmem:[%s1489_s6 + $0x20] sm:$0xff]   ;;  %v1113_v18 = vld [vmem:[%s1491_s8 + $0x38] sm:$0xff]   ;;  %v1114_v19 = vld [vmem:[%s1491_s8 + $0x30] sm:$0xff]  }
  0x18   :  { %507 = vmatpush1.bf16.msra.mxu1 %v1058_v23  ;;  %528 = vmatprep.mubr.bf16.mxu1 %v40_v62  ;;  %v1115_v20 = vld [vmem:[%s1491_s8 + $0x28] sm:$0xff]   ;;  %v1116_v21 = vld [vmem:[%s1491_s8 + $0x20] sm:$0xff]   ;;  %v1118_v23 = vld [vmem:[%s1491_s8 + $0x10] sm:$0xff]  }
  0x19   :  { %508 = vmatprep.subr.bf16.mxu1 %v1059_v25  ;;  %v1120_v25 = vld [vmem:[%s1491_s8] sm:$0xff]  }
  0x1a   :  { %984 = vmatpush3.bf16.msra.mxu0 %v1039_v16  ;;  %v1111_v16 = vld [vmem:[%s1489_s6 + $0x8] sm:$0xff]  }
  0x1b   :  { %985 = vmatprep.subr.bf16.mxu0 %v1133_v0 }
  0x1c   :  { %509 = vmatpush1.bf16.msra.mxu1 %v1061_v28 }
  0x1d   :  { %510 = vmatprep.subr.bf16.mxu1 %v1062_v29  ;;  %v223_v29 = vld [vmem:[%s1492_s5] sm:$0x7] }
  0x1e   :  { %986 = vmatpush3.bf16.msra.mxu0 %v1040_v17  ;;  %v1112_v17 = vld [vmem:[%s1489_s6] sm:$0xff]  }
  0x1f   :  { %931 = vmatprep.subr.bf16.mxu0 %v1065_v22  ;;  %v1117_v22 = vld [vmem:[%s1491_s8 + $0x18] sm:$0xff]  }
  0x20   :  { %511 = vmatpush1.bf16.msra.mxu1 %v1064_v32 }
  0x21   :  { %988 = vmatmul.mubr.bf16.vlgmr.msra.gmra.mxu0 %v43_v24  ;;  %512 = vmatprep.subr.bf16.mxu1 %v1066_v33  ;;  %v1119_v24 = vld [vmem:[%s1491_s8 + $0x8] sm:$0xff]  }
  0x22   :  { %932 = vmatpush3.bf16.msra.mxu0 %v1068_v26  ;;  %571 = vmatprep.mubr.bf16.mxu0 %v40_v62  ;;  %v225_v26 = vlaneseq }
  0x23   :  { %933 = vmatprep.subr.bf16.mxu0 %v1070_v27 }
  0x24   :  { %513 = vmatpush2.bf16.msra.mxu1 %v1069_v34  ;;  %v226_v27 = vshrl.u32 %v225_v26, 7 }
  0x25   :  { %514 = vmatprep.subr.bf16.mxu1 %v1071_v36 }
  0x26   :  { %934 = vmatpush3.bf16.msra.mxu0 %v1073_v30  ;;  %v227_v28 = vsub.s32 0, %v226_v27 }
  0x27   :  { %935 = vmatprep.subr.bf16.mxu0 %v1075_v31 }
  0x28   :  { %515 = vmatpush2.bf16.msra.mxu1 %v1074_v40  ;;  %v228_v31 = vrot.slane %v223_v29, %v227_v28 }
  0x29   :  { %516 = vmatprep.subr.bf16.mxu1 %v1076_v41 }
  0x2a   :  { %936 = vmatpush3.bf16.msra.mxu0 %v1078_v35 }
  0x2b   :  { %937 = vmatprep.subr.bf16.mxu0 %v1080_v37  ;;  %v231_v37 = vsub.s32 1, %v226_v27 }
  0x2c   :  { %517 = vmatpush2.bf16.msra.mxu1 %v1079_v44 }
  0x2d   :  { %518 = vmatprep.subr.bf16.mxu1 %v1081_v45 }
  0x2e   :  { %938 = vmatpush3.bf16.msra.mxu0 %v1083_v38 }
  0x2f   :  { %939 = vmatprep.subr.bf16.mxu0 %v1085_v39  ;;  %v232_v39 = vrot.slane %v223_v29, %v231_v37 }
  0x30   :  { %519 = vmatpush2.bf16.msra.mxu1 %v1084_v47  ;;  %v235_v47 = vsub.s32 2, %v226_v27 }
  0x31   :  { %520 = vmatprep.subr.bf16.mxu1 %v1086_v48 }
  0x32   :  { %940 = vmatpush3.bf16.msra.mxu0 %v1088_v42 }
  0x33   :  { %941 = vmatprep.subr.bf16.mxu0 %v1090_v43 }
  0x34   :  { %521 = vmatpush2.bf16.msra.mxu1 %v1089_v49 }
  0x35   :  { %522 = vmatprep.subr.bf16.mxu1 %v1091_v50 }
  0x36   :  { %942 = vmatpush3.bf16.msra.mxu0 %v1093_v46 }
  0x37   :  { %943 = vmatprep.subr.bf16.mxu0 %v1095_v52  ;;  %v904_v52 = vld [vmem:[%s1493_s7] ss:$0 sm:$0xff] }
  0x38   :  { %523 = vmatpush2.bf16.msra.mxu1 %v1094_v51 }
  0x39   :  { %524 = vmatprep.subr.bf16.mxu1 %v1096_v53  ;;  %v236_v53 = vrot.slane %v223_v29, %v235_v47 }
  0x3a   :  { %944 = vmatpush3.bf16.msra.mxu0 %v1098_v54 }
  0x3b   :  { %945 = vmatprep.subr.bf16.mxu0 %v1100_v56 }
  0x3c   :  { %525 = vmatpush2.bf16.msra.mxu1 %v1099_v55 }
  0x3d   :  { %526 = vmatprep.subr.bf16.mxu1 %v1101_v57 }
  0x3e   :  { %946 = vmatpush3.bf16.msra.mxu0 %v1103_v58 }
  0x3f   :  { %991 = vmatprep.subr.bf16.mxu0 %v1133_v0 }
  0x40   :  { %527 = vmatpush2.bf16.msra.mxu1 %v1104_v59 }
  0x41   :  { %1011 = vmatprep.subr.bf16.mxu1 %v1133_v0 }
  0xe1   :  { %v149_v1 = vpop.f32.mrf.mxu0 }
  0xe2   :  { %v150_v3 = vadd.f32 %v847_v63, %v149_v1 }
  0xe3   :  { %v989_v2 = vpop.f32.mrf.mxu0 }
  0xe4   :  { %v156_v7 = vmax.f32 %v150_v3, 0.0 }
  0xe5   :  { %v152_v4 = vpop.f32.mrf.mxu0 }
  0xe6   :  { %v153_v5 = vadd.f32 %v847_v63, %v152_v4 }
  0xe7   :  { %v990_v6 = vpop.f32.mrf.mxu0 }
  0xe8   :  { %v157_v8 = vmax.f32 %v153_v5, 0.0 }
  0xea   :  { %v158_v10 = vpack.c.bf16 %v157_v8, %v156_v7 }
  0xec   :  { %529 = vmatmul.mubr.bf16.vlgmr.msra.gmra.mxu1 %v158_v10  ;;  %572 = vmatmul.mubr.bf16.vlgmr.msra.gmra.mxu0 %v158_v10 }
  0xed   :  { %992 = vmatpush3.bf16.msra.mxu0 %v1105_v9  ;;  %1007 = vmatprep.mubr.msk.bf16.mxu0 %vm1134_vm0, %v1133_v0 }
  0xee   :  { %993 = vmatprep.subr.bf16.mxu0 %v1133_v0  ;;  %1027 = vmatprep.mubr.msk.bf16.mxu1 %vm1134_vm0, %v1133_v0 }
  0xef   :  { %1012 = vmatpush3.bf16.msra.mxu1 %v1113_v18 }
  0xf0   :  { %1013 = vmatprep.subr.bf16.mxu1 %v1133_v0 }
  0xf1   :  { %994 = vmatpush3.bf16.msra.mxu0 %v1106_v11 }
  0xf2   :  { %995 = vmatprep.subr.bf16.mxu0 %v1133_v0 }
  0xf3   :  { %1014 = vmatpush3.bf16.msra.mxu1 %v1114_v19 }
  0xf4   :  { %1015 = vmatprep.subr.bf16.mxu1 %v1133_v0 }
  0xf5   :  { %996 = vmatpush3.bf16.msra.mxu0 %v1107_v12 }
  0xf6   :  { %997 = vmatprep.subr.bf16.mxu0 %v1133_v0 }
  0xf7   :  { %1016 = vmatpush3.bf16.msra.mxu1 %v1115_v20 }
  0xf8   :  { %1017 = vmatprep.subr.bf16.mxu1 %v1133_v0 }
  0xf9   :  { %998 = vmatpush3.bf16.msra.mxu0 %v1108_v13 }
  0xfa   :  { %999 = vmatprep.subr.bf16.mxu0 %v1133_v0 }
  0xfb   :  { %1018 = vmatpush3.bf16.msra.mxu1 %v1116_v21 }
  0xfc   :  { %1019 = vmatprep.subr.bf16.mxu1 %v1133_v0 }
  0xfd   :  { %1000 = vmatpush3.bf16.msra.mxu0 %v1109_v14 }
  0xfe   :  { %1001 = vmatprep.subr.bf16.mxu0 %v1133_v0 }
  0xff   :  { %1020 = vmatpush3.bf16.msra.mxu1 %v1117_v22 }
 0x100   :  { %1021 = vmatprep.subr.bf16.mxu1 %v1133_v0 }
 0x101   :  { %1002 = vmatpush3.bf16.msra.mxu0 %v1110_v15 }
 0x102   :  { %1003 = vmatprep.subr.bf16.mxu0 %v1133_v0 }
 0x103   :  { %1022 = vmatpush3.bf16.msra.mxu1 %v1118_v23 }
 0x104   :  { %1023 = vmatprep.subr.bf16.mxu1 %v1133_v0 }
 0x105   :  { %1004 = vmatpush3.bf16.msra.mxu0 %v1111_v16 }
 0x106   :  { %1005 = vmatprep.subr.bf16.mxu0 %v1133_v0 }
 0x107   :  { %1024 = vmatpush3.bf16.msra.mxu1 %v1119_v24 }
 0x108   :  { %1025 = vmatprep.subr.bf16.mxu1 %v1133_v0 }
 0x109   :  { %1006 = vmatpush3.bf16.msra.mxu0 %v1112_v17 }
 0x10b   :  { %1026 = vmatpush3.bf16.msra.mxu1 %v1120_v25 }
 0x10c   :  { %1008 = vmatmul.mubr.bf16.vlgmr.msra.gmra.mxu0 %v40_v62 }
 0x1ac   :  { %v530_v30 = vpop.f32.mrf.mxu1  ;;  %v947_v0 = vpop.f32.mrf.mxu0 }
 0x1ad   :  { %v531_v33 = vadd.f32 %v530_v30, %v228_v31 }
 0x1ae   :  { %v532_v32 = vpop.f32.mrf.mxu1  ;;  %v948_v42 = vpop.f32.mrf.mxu0 }
 0x1af   :  { %v692_v35 = vmul.f32 0.5, %v531_v33  ;;  %v533_v40 = vadd.f32 %v532_v32, %v232_v39  ;;  %v949_v54 = vadd.f32 %v948_v42, %v947_v0 }
 0x1b0   :  { %v534_v34 = vpop.f32.mrf.mxu1  ;;  %v950_v46 = vpop.f32.mrf.mxu0 }
 0x1b1   :  { %v535_v36 = vadd.f32 %v534_v34, %v228_v31  ;;  %1121 = vtanh.f32 %v692_v35  ;;  %v700_v43 = vmul.f32 0.5, %v533_v40  ;;  %v574_v62 = vadd.f32 %v949_v54, %v236_v53 }
 0x1b2   :  { %v536_v41 = vpop.f32.mrf.mxu1  ;;  %v951_v51 = vpop.f32.mrf.mxu0 }
 0x1b3   :  { %v693_v38 = vmul.f32 0.5, %v535_v36  ;;  %v537_v44 = vadd.f32 %v536_v41, %v232_v39  ;;  %v952_v63 = vadd.f32 %v951_v51, %v950_v46 }
 0x1b5   :  { %1123 = vtanh.f32 %v693_v38  ;;  %v701_v48 = vmul.f32 0.5, %v537_v44  ;;  %v577_v7 = vadd.f32 %v952_v63, %v236_v53 }
 0x1b6   :  { %1125 = vtanh.f32 %v700_v43 }
 0x1b7   :  { %1127 = vtanh.f32 %v701_v48 }
 0x1be   :  { %v1122_v45 = vpop.eup %1121 }
 0x1bf   :  { %v696_v49 = vadd.f32 1.0, %v1122_v45 }
 0x1c1   :  { %v698_v57 = vmul.f32 0.5, %v696_v49 }
 0x1c2   :  { %v1124_v50 = vpop.eup %1123 }
 0x1c3   :  { %v697_v58 = vadd.f32 1.0, %v1124_v50  ;;  %v1126_v9 = vpop.eup %1125 }
 0x1c4   :  { %v704_v11 = vadd.f32 1.0, %v1126_v9  ;;  %v1128_v12 = vpop.eup %1127 }
 0x1c5   :  { %v699_v5 = vmul.f32 0.5, %v697_v58  ;;  %v705_v14 = vadd.f32 1.0, %v1128_v12 }
 0x1c6   :  { %v706_v13 = vmul.f32 0.5, %v704_v11 }
 0x1c7   :  { %v707_v16 = vmul.f32 0.5, %v705_v14 }
 0x1c8   :  { %v714_v15 = vsub.f32 1.0, %v706_v13  ;;  %v718_v18 = vmul.f32 %v706_v13, %v1382_v60  ;;  %v913_v60 = vld [vmem:[%s1495_s9] ss:$0 sm:$0xff] }
 0x1c9   :  { %v715_v20 = vsub.f32 1.0, %v707_v16  ;;  %v719_v23 = vmul.f32 %v707_v16, %v1387_v61 }
 0x1cc   :  { %v685_v55 = vpop.f32.mrf.mxu0 }
 0x1cd   :  { %v686_v56 = vadd.f32 %v904_v52, %v685_v55 }
 0x1ce   :  { %v1009_v59 = vpop.f32.mrf.mxu0 }
 0x1cf   :  { %v708_v1 = vmul.f32 %v698_v57, %v686_v56 }
 0x1d0   :  { %v688_v2 = vpop.f32.mrf.mxu0 }
 0x1d1   :  { %v710_v3 = vadd.f32 %v708_v1, %v574_v62  ;;  %v689_v4 = vadd.f32 %v904_v52, %v688_v2 }
 0x1d2   :  { %v1010_v6 = vpop.f32.mrf.mxu0 }
 0x1d3   :  { %1129 = vtanh.f32 %v710_v3  ;;  %v709_v8 = vmul.f32 %v699_v5, %v689_v4 }
 0x1d5   :  { %v711_v10 = vadd.f32 %v709_v8, %v577_v7 }
 0x1d7   :  { %1131 = vtanh.f32 %v711_v10 }
 0x1e0   :  { %v1130_v17 = vpop.eup %1129 }
 0x1e1   :  { %v716_v19 = vmul.f32 %v1130_v17, %v714_v15 }
 0x1e3   :  { %v720_v21 = vadd.f32 %v718_v18, %v716_v19 }
 0x1e4   :  { %v1132_v22 = vpop.eup %1131 }
 0x1e5   :  { %v717_v24 = vmul.f32 %v1132_v22, %v715_v20  ;;  %837 = vst [vmem:[%s1494_s11] sm:$0xff] %v720_v21 }
 0x1e7   :  { %v721_v25 = vadd.f32 %v719_v23, %v717_v24 }
 0x1e9   :  { %v722_v26 = vpack.c.bf16 %v721_v25, %v720_v21  ;;  %838 = vst [vmem:[%s1494_s11 + $0x8] sm:$0xff] %v721_v25 }
 0x1eb   :  { %1028 = vmatmul.mubr.bf16.vlgmr.msra.gmra.mxu1 %v722_v26 }
 0x2ab   :  { %v828_v27 = vpop.f32.mrf.mxu1 }
 0x2ac   :  { %v829_v28 = vadd.f32 %v913_v60, %v828_v27 }
 0x2ad   :  { %v1029_v29 = vpop.f32.mrf.mxu1 }
 0x2ae   :  { %835 = vst [vmem:[%s1496_s10] sm:$0xff] %v829_v28 }
 0x2af   :  { %v831_v61 = vpop.f32.mrf.mxu1 }
 0x2b0   :  { %v832_v30 = vadd.f32 %v913_v60, %v831_v61 }
 0x2b1   :  { %v1030_v31 = vpop.f32.mrf.mxu1 }
 0x2b2   :  { %836 = vst [vmem:[%s1496_s10 + $0x8] sm:$0xff] %v832_v30 }

</bundles_post_ra>
